<compile_context>
chip_gen: v5e
topology: v5e:2x2
jax: 0.10.0
libtpu: 0.0.40
codegen_flags: <defaults>
</compile_context>

<pallas_src>
import jax
import jax.numpy as jnp
import numpy as np
from jax.experimental import pallas as pl
from jax.experimental.pallas import tpu as pltpu


def _round_up(x, m):
    return ((x + m - 1) // m) * m


# ----------------------------- Pallas kernel --------------------------------
def _linear_bias_kernel(x_ref, w_ref, b_ref, o_ref):
    # x_ref : (tile_n, in_pad)     w_ref : (in_pad, tile_out)
    # b_ref : (1, tile_out) f32    o_ref : (tile_n, tile_out)
    y = jnp.dot(x_ref[...], w_ref[...], preferred_element_type=jnp.float32)
    o_ref[...] = (y + b_ref[...].astype(jnp.float32)).astype(o_ref.dtype)


def block_sparse_linear(x, base_weight, bias, sparse_blocks, block_rows,
                        block_cols, block_size, *, compute_dtype=None):
    """y = x @ (base_weight + dense(sparse_blocks)).T + bias

    x            : (..., in_features)
    base_weight  : (out_features, in_features)   -- nn.Linear convention
    bias         : (out_features,)
    sparse_blocks: (n_blocks, block_size, block_size)
    block_rows/cols: python lists of block coordinates (static layout)
    compute_dtype: optional matmul input dtype (e.g. jnp.bfloat16 on v6e/v7x);
                   accumulation and bias epilogue stay in f32.
    """
    out_f, in_f = base_weight.shape
    lead_shape = x.shape[:-1]
    x2d = x.reshape(-1, in_f)
    n = x2d.shape[0]

    # --- glue: densify the block-sparse delta with ONE batched scatter ------
    bs = block_size
    nbr, nbc = out_f // bs, in_f // bs
    flat_idx = jnp.asarray(
        np.asarray(block_rows, dtype=np.int32) * nbc
        + np.asarray(block_cols, dtype=np.int32))
    dw_blocks = jnp.zeros((nbr * nbc, bs, bs), dtype=base_weight.dtype)
    dw_blocks = dw_blocks.at[flat_idx].set(
        sparse_blocks.astype(base_weight.dtype))
    dw = (dw_blocks.reshape(nbr, nbc, bs, bs)
                   .transpose(0, 2, 1, 3)
                   .reshape(out_f, in_f))

    # SP_ADD hoisted out of the kernel: single effective weight, summed in f32,
    # transposed so out_features maps to the TPU lane (last, 128-wide) dim.
    w_eff_t = (base_weight + dw).T                         # (in, out)

    # --- padding / tiling ----------------------------------------------------
    in_pad = _round_up(in_f, 128)                          # lane-dense x loads
    out_pad = _round_up(out_f, 128)                        # lane-dense stores

    tile_n = 512 if n >= 512 else _round_up(max(n, 8), 8)  # big M tile, 8-mult
    n_pad = _round_up(n, tile_n)
    tile_out = 256 if out_pad >= 256 else out_pad          # 128-multiple

    if compute_dtype is None:
        compute_dtype = x.dtype

    x_p = jnp.zeros((n_pad, in_pad), dtype=compute_dtype)
    x_p = x_p.at[:n, :in_f].set(x2d.astype(compute_dtype))
    w_p = jnp.zeros((in_pad, out_pad), dtype=compute_dtype)
    w_p = w_p.at[:in_f, :out_f].set(w_eff_t.astype(compute_dtype))
    b_p = jnp.zeros((1, out_pad), dtype=jnp.float32)
    b_p = b_p.at[0, :out_f].set(bias.astype(jnp.float32))

    grid = (n_pad // tile_n, out_pad // tile_out)

    in_bytes = jnp.dtype(compute_dtype).itemsize
    out_bytes = jnp.dtype(x.dtype).itemsize
    cost = pl.CostEstimate(
        flops=2 * n_pad * in_pad * out_pad,
        transcendentals=0,
        bytes_accessed=(n_pad * in_pad * in_bytes
                        + in_pad * out_pad * in_bytes
                        + out_pad * 4
                        + n_pad * out_pad * out_bytes),
    )

    y2d_p = pl.pallas_call(
        _linear_bias_kernel,
        out_shape=jax.ShapeDtypeStruct((n_pad, out_pad), x.dtype),
        grid=grid,
        in_specs=[
            pl.BlockSpec((tile_n, in_pad), lambda i, j: (i, 0)),
            pl.BlockSpec((in_pad, tile_out), lambda i, j: (0, j)),
            pl.BlockSpec((1, tile_out), lambda i, j: (0, j)),
        ],
        out_specs=pl.BlockSpec((tile_n, tile_out), lambda i, j: (i, j)),
        compiler_params=pltpu.CompilerParams(
            dimension_semantics=("parallel", "parallel"),
            vmem_limit_bytes=64 * 1024 * 1024,
        ),
        cost_estimate=cost,
    )(x_p, w_p, b_p)

    y2d = y2d_p[:n, :out_f]
    return y2d.reshape(*lead_shape, out_f)


# ------------------------------- demo / test ---------------------------------
if __name__ == "__main__":
    key = jax.random.PRNGKey(0)
    k_x, k_w, k_b, k_s = jax.random.split(key, 4)

    # Module-implied shapes (small): linear with in=32, out=32, block_size=16,
    # keep_ratio=0.5 -> 2 of the 4 (16x16) blocks are kept.
    batch, seq, in_f, out_f = 2, 8, 32, 32
    block_size = 16
    block_rows = [0, 1]
    block_cols = [1, 0]
    n_blocks = len(block_rows)

    x = jax.random.normal(k_x, (batch, seq, in_f), dtype=jnp.float32)
    base_weight = jax.random.normal(k_w, (out_f, in_f), dtype=jnp.float32) * 0.1
    base_bias = jax.random.normal(k_b, (out_f,), dtype=jnp.float32) * 0.1
    # sparse_weights parameter: (n_blocks, block_size, block_size)
    sparse_blocks = jax.random.normal(
        k_s, (n_blocks, block_size, block_size), dtype=jnp.float32) * 0.05

    y = block_sparse_linear(x, base_weight, base_bias, sparse_blocks,
                            block_rows, block_cols, block_size)
    y = jax.block_until_ready(y)

    # reference in plain NumPy
    dw_ref = np.zeros((out_f, in_f), dtype=np.float32)
    sb = np.asarray(sparse_blocks)
    for b, (r, c) in enumerate(zip(block_rows, block_cols)):
        dw_ref[r * block_size:(r + 1) * block_size,
               c * block_size:(c + 1) * block_size] = sb[b]
    w_eff = np.asarray(base_weight) + dw_ref
    y_ref = np.asarray(x).reshape(-1, in_f) @ w_eff.T + np.asarray(base_bias)
    y_ref = y_ref.reshape(batch, seq, out_f)

    np.testing.assert_allclose(np.asarray(y), y_ref, rtol=1e-5, atol=1e-5)
    print("KERNEL_OK")
</pallas_src>

<mosaic_0001>
module attributes {stable_mosaic.version = 11 : i64} {
  func.func @_linear_bias_kernel(%arg0: i32, %arg1: i32, %arg2: memref<16x128xf32, #tpu.memory_space<vmem>>, %arg3: memref<128x128xf32, #tpu.memory_space<vmem>>, %arg4: memref<1x128xf32, #tpu.memory_space<vmem>>, %arg5: memref<16x128xf32, #tpu.memory_space<vmem>>) attributes {dimension_semantics = [#tpu.dimension_semantics<parallel>, #tpu.dimension_semantics<parallel>], iteration_bounds = array<i64: 1, 1>, scalar_prefetch = 0 : i64, scratch_operands = 0 : i64, tpu.core_type = #tpu.core_type<tc>, window_params = [{transform_indices = @transform_0, window_bounds = array<i64: 16, 128>}, {transform_indices = @transform_1, window_bounds = array<i64: 128, 128>}, {transform_indices = @transform_2, window_bounds = array<i64: 1, 128>}, {transform_indices = @transform_3, window_bounds = array<i64: 16, 128>}]} {
    %c0 = arith.constant 0 : index
    %c0_0 = arith.constant 0 : index
    %0 = vector.load %arg2[%c0, %c0_0] : memref<16x128xf32, #tpu.memory_space<vmem>>, vector<16x128xf32>
    %c0_1 = arith.constant 0 : index
    %c0_2 = arith.constant 0 : index
    %1 = vector.load %arg3[%c0_1, %c0_2] : memref<128x128xf32, #tpu.memory_space<vmem>>, vector<128x128xf32>
    %cst = arith.constant dense<0.000000e+00> : vector<16x128xf32>
    %2 = tpu.matmul %0, %1, %cst {dimension_numbers = #tpu.dot_dimension_numbers<[1], [0], [0], [1], [0, 0, 1, 1], [], []>} : vector<16x128xf32>, vector<128x128xf32>, vector<16x128xf32> -> vector<16x128xf32>
    %c0_3 = arith.constant 0 : index
    %c0_4 = arith.constant 0 : index
    %3 = vector.load %arg4[%c0_3, %c0_4] : memref<1x128xf32, #tpu.memory_space<vmem>>, vector<1x128xf32>
    %4 = vector.broadcast %3 : vector<1x128xf32> to vector<16x128xf32>
    %5 = arith.addf %2, %4 : vector<16x128xf32>
    %c0_5 = arith.constant 0 : index
    %c0_6 = arith.constant 0 : index
    %6 = vector.load %arg5[%c0_5, %c0_6] : memref<16x128xf32, #tpu.memory_space<vmem>>, vector<16x128xf32>
    tpu.vector_store %arg5[%c0_5, %c0_6], %5 {strides = array<i32>} : memref<16x128xf32, #tpu.memory_space<vmem>>, vector<16x128xf32>,
    return
  }
  func.func @transform_0(%arg0: i32, %arg1: i32) -> (i32, i32) {
    %c0_i32 = arith.constant 0 : i32
    %c0_i32_0 = arith.constant 0 : i32
    return %arg0, %c0_i32 : i32, i32
  }
  func.func @transform_1(%arg0: i32, %arg1: i32) -> (i32, i32) {
    %c0_i32 = arith.constant 0 : i32
    %c0_i32_0 = arith.constant 0 : i32
    return %c0_i32, %arg1 : i32, i32
  }
  func.func @transform_2(%arg0: i32, %arg1: i32) -> (i32, i32) {
    %c0_i32 = arith.constant 0 : i32
    %c0_i32_0 = arith.constant 0 : i32
    return %c0_i32, %arg1 : i32, i32
  }
  func.func @transform_3(%arg0: i32, %arg1: i32) -> (i32, i32) {
    %c0_i32 = arith.constant 0 : i32
    return %arg0, %arg1 : i32, i32
  }
}

</mosaic_0001>

<bundles_post_ra>
// kernel: tpu_custom_call.1
= control target key start
LH: loop header
LB: loop body
LE: loop exit
PB: predicated region body
PF: predicated region fallthrough
CT: control target
= control target key end

     0   :  { %8 = vsyncpa [#allocation3], 0  ;;  %s260_s0 = inlined_call_operand.hbm [shape: f32[16,128], index: 0, kind: input, shape index: {}]   ;;  %s261_s1 = inlined_call_operand.hbm [shape: f32[128,128], index: 1, kind: input, shape index: {}]   ;;  %s262_s2 = inlined_call_operand.vmem [shape: f32[1,128], index: 2, kind: input, shape index: {}]   ;;  %s263_s3 = inlined_call_operand.hbm [shape: f32[16,128], index: 3, kind: output, shape index: {}]  }
   0x1   :  { %9 = vsyncpa [#allocation6], 0 }
   0x2   :  { %10 = vsyncpa [#allocation4], 0  ;;  %s15_s14 = sshll.u32 %s260_s0, 4  ;;  %s214_s15 = smov [#allocation2]   ;;  %s16_s14 = int_to_ptr.hbm [resolvable:$true] %s15_s14 }
   0x3   :  { %s17_s16 = sshll.u32 %s214_s15, 4  ;;  %s28_s19 = sshll.u32 %s261_s1, 4  ;;  %s18_s16 = int_to_ptr.vmem [resolvable:$true] %s17_s16  ;;  %s29_s19 = int_to_ptr.hbm [resolvable:$true] %s28_s19 }
   0x4   :  { %s215_s20 = smov 128   ;;  %s216_s21 = smov 8  }
   0x5   :  { %23 = dma.hbm_to_vmem [thread:$0]  %s16_s14, 256, %s18_s16, [#allocation3], %s215_s20, %s215_s20, %s216_s21  }
   0x6   :  { %s217_s22 = smov [#allocation5]  }
   0x7   :  { %s30_s23 = sshll.u32 %s217_s22, 4  ;;  %s31_s23 = int_to_ptr.vmem [resolvable:$true] %s30_s23 }
   0x8   :  { %36 = dma.hbm_to_vmem [thread:$0]  %s29_s19, 2048, %s31_s23, [#allocation6], %s215_s20, %s215_s20, %s216_s21  }
   0x9   :  { %208 = dma.done.wait [#allocation3], 256  }
   0xa   :  { %209 = vsyncadd [#allocation3], 4294967040 }
   0xb   :  { %210 = dma.done.wait [#allocation6], 2048  }
   0xc   :  { %211 = vsyncadd [#allocation6], 4294965248  ;;  %v64_v0 = vld [vmem:[#allocation5 + $0x78] sm:$0xff]  ;;  %v63_v1 = vld [vmem:[#allocation5 + $0x70] sm:$0xff]  ;;  %s218_s24 = smov [#allocation7]   ;;  %s100_s28 = sshll.u32 %s263_s3, 4  ;;  %s101_s28 = int_to_ptr.hbm [resolvable:$true] %s100_s28 }
   0xd   :  { %69 = vmatpush.msra.mxu0 %v64_v0  ;;  %114 = vmatpush.msra.mxu1 %v64_v0  ;;  %v62_v2 = vld [vmem:[#allocation5 + $0x68] sm:$0xff]  ;;  %v61_v3 = vld [vmem:[#allocation5 + $0x60] sm:$0xff]  ;;  %v60_v4 = vld [vmem:[#allocation5 + $0x58] sm:$0xff]  ;;  %s98_s25 = sshll.u32 %s218_s24, 4  ;;  %s99_s25 = int_to_ptr.vmem [resolvable:$true] %s98_s25 }
   0xe   :  { %v59_v5 = vld [vmem:[#allocation5 + $0x50] sm:$0xff]  ;;  %v58_v6 = vld [vmem:[#allocation5 + $0x48] sm:$0xff]  ;;  %v57_v7 = vld [vmem:[#allocation5 + $0x40] sm:$0xff] }
   0xf   :  { %70 = vmatpush.msra.mxu0 %v63_v1  ;;  %115 = vmatpush.msra.mxu1 %v63_v1  ;;  %v56_v8 = vld [vmem:[#allocation5 + $0x38] sm:$0xff]  ;;  %v55_v9 = vld [vmem:[#allocation5 + $0x30] sm:$0xff]  ;;  %v54_v10 = vld [vmem:[#allocation5 + $0x28] sm:$0xff] }
  0x10   :  { %v53_v11 = vld [vmem:[#allocation5 + $0x20] sm:$0xff]  ;;  %v52_v12 = vld [vmem:[#allocation5 + $0x18] sm:$0xff]  ;;  %v51_v13 = vld [vmem:[#allocation5 + $0x10] sm:$0xff] }
  0x11   :  { %71 = vmatpush.msra.mxu0 %v62_v2  ;;  %116 = vmatpush.msra.mxu1 %v62_v2  ;;  %v50_v14 = vld [vmem:[#allocation5 + $0x8] sm:$0xff]  ;;  %v49_v15 = vld [vmem:[#allocation5] sm:$0xff]  ;;  %v47_v16 = vld [vmem:[#allocation2] sm:$0xff] }
  0x12   :  { %v48_v17 = vld [vmem:[#allocation2 + $0x8] sm:$0xff]  ;;  %v135_v18 = vld [vmem:[%s262_s2] ss:$0 sm:$0xff] }
  0x13   :  { %72 = vmatpush.msra.mxu0 %v61_v3  ;;  %117 = vmatpush.msra.mxu1 %v61_v3 }
  0x15   :  { %73 = vmatpush.msra.mxu0 %v60_v4  ;;  %118 = vmatpush.msra.mxu1 %v60_v4 }
  0x17   :  { %74 = vmatpush.msra.mxu0 %v59_v5  ;;  %119 = vmatpush.msra.mxu1 %v59_v5 }
  0x19   :  { %75 = vmatpush.msra.mxu0 %v58_v6  ;;  %120 = vmatpush.msra.mxu1 %v58_v6 }
  0x1b   :  { %76 = vmatpush.msra.mxu0 %v57_v7  ;;  %121 = vmatpush.msra.mxu1 %v57_v7 }
  0x1d   :  { %77 = vmatpush.msra.mxu0 %v56_v8  ;;  %122 = vmatpush.msra.mxu1 %v56_v8 }
  0x1f   :  { %78 = vmatpush.msra.mxu0 %v55_v9  ;;  %123 = vmatpush.msra.mxu1 %v55_v9 }
  0x21   :  { %79 = vmatpush.msra.mxu0 %v54_v10  ;;  %124 = vmatpush.msra.mxu1 %v54_v10 }
  0x23   :  { %80 = vmatpush.msra.mxu0 %v53_v11  ;;  %125 = vmatpush.msra.mxu1 %v53_v11 }
  0x25   :  { %81 = vmatpush.msra.mxu0 %v52_v12  ;;  %126 = vmatpush.msra.mxu1 %v52_v12 }
  0x27   :  { %82 = vmatpush.msra.mxu0 %v51_v13  ;;  %127 = vmatpush.msra.mxu1 %v51_v13 }
  0x29   :  { %83 = vmatpush.msra.mxu0 %v50_v14  ;;  %128 = vmatpush.msra.mxu1 %v50_v14 }
  0x2b   :  { %84 = vmatpush.msra.mxu0 %v49_v15  ;;  %129 = vmatpush.msra.mxu1 %v49_v15 }
  0x2c   :  { %85 = vmatmul.f32.vlgmr.msra.gmra.mxu0 %v47_v16  ;;  %88 = vmatmul.f32.vlgmr.msra.gmra.mxu1 %v48_v17 }
  0xa9   :  { %v86_v19 = vpop.f32.mrf.mxu0  ;;  %v89_v20 = vpop.f32.mrf.mxu1 }
  0xaa   :  { %v87_v21 = vadd.f32 %v135_v18, %v86_v19  ;;  %v90_v22 = vadd.f32 %v135_v18, %v89_v20 }
  0xac   :  { %92 = vst [vmem:[#allocation7] sm:$0xff] %v87_v21 }
  0xad   :  { %93 = vst [vmem:[#allocation7 + $0x8] sm:$0xff] %v90_v22 }
  0xae   :  { %106 = dma.vmem_to_hbm [thread:$0]  %s99_s25, 256, %s101_s28, [#allocation4], %s215_s20, %s215_s20, %s216_s21  }
  0xaf   :  { %212 = dma.done.wait [#allocation4], 256  }
  0xb0   :  { %213 = vsyncadd [#allocation4], 4294967040 }
  0xb1   :  { %111 = vsyncpa [#allocation3], 1 }
  0xb2   :  { %112 = vsyncpa [#allocation6], 1 }
  0xb3   :  { %113 = vsyncpa [#allocation4], 1 }

</bundles_post_ra>
